<compile_context>
chip_gen: v5e
topology: v5e:2x2
jax: 0.10.0
libtpu: 0.0.40
codegen_flags: <defaults>
</compile_context>

<pallas_src>
import functools

import jax
import jax.numpy as jnp
from jax.experimental import pallas as pl
from jax.experimental.pallas import tpu as pltpu

LEAKY_SLOPE = 0.01  # nn.LeakyReLU() default negative_slope


def _round_up(v, m):
    return (v + m - 1) // m * m


# ----------------------------- Pallas kernel ------------------------------ #
def _mm_bias_act_kernel(x_ref, w_ref, b_ref, o_ref, acc_ref, *, leaky):
    """One (tm, tn) output tile; K is the innermost ('arbitrary') grid axis."""
    @pl.when(pl.program_id(2) == 0)
    def _init():
        acc_ref[...] = jnp.zeros_like(acc_ref)

    acc_ref[...] += jnp.dot(x_ref[...], w_ref[...],
                            preferred_element_type=jnp.float32)

    @pl.when(pl.program_id(2) == pl.num_programs(2) - 1)
    def _finalize():
        acc = acc_ref[...] + b_ref[...]              # bias in f32
        if leaky:
            acc = jnp.where(acc >= 0, acc, LEAKY_SLOPE * acc)
        o_ref[...] = acc.astype(o_ref.dtype)


def matmul_bias_act(x, w_p, b, *, leaky):
    """x:(M,K) f32  @  w_p:(Kp,Np) pre-padded bf16  + b:(N,) -> (M,N) f32."""
    M, K = x.shape
    Kp, Np = w_p.shape
    N = b.shape[0]
    assert K <= Kp and N <= Np

    # Tile sizes: lane-dense 256-wide N tiles when possible (feeds the 256x256
    # MXUs on v6e/v7x; still fine on v5e's 128x128), K resident when it fits a
    # single block, 512-wide K tiles otherwise; M padded to sublane multiples.
    tn = 256 if Np % 256 == 0 else 128
    tk = Kp if Kp <= 1024 else 512
    Mp = _round_up(M, 8)
    if Mp > 256:
        tm = 256
        Mp = _round_up(Mp, tm)
    else:
        tm = Mp

    # Zero-pad the activation to the tile grid; MXU operands in bf16.
    xp = jnp.zeros((Mp, Kp), jnp.bfloat16).at[:M, :K].set(x.astype(jnp.bfloat16))
    bp = jnp.zeros((1, Np), jnp.float32).at[0, :N].set(b.astype(jnp.float32))

    grid = (Mp // tm, Np // tn, Kp // tk)
    out = pl.pallas_call(
        functools.partial(_mm_bias_act_kernel, leaky=leaky),
        out_shape=jax.ShapeDtypeStruct((Mp, Np), jnp.float32),
        grid_spec=pltpu.PrefetchScalarGridSpec(
            num_scalar_prefetch=0,
            grid=grid,
            in_specs=[
                pl.BlockSpec((tm, tk), lambda i, j, k: (i, k)),
                pl.BlockSpec((tk, tn), lambda i, j, k: (k, j)),
                pl.BlockSpec((1, tn), lambda i, j, k: (0, j)),
            ],
            out_specs=pl.BlockSpec((tm, tn), lambda i, j, k: (i, j)),
            scratch_shapes=[pltpu.VMEM((tm, tn), jnp.float32)],
        ),
        compiler_params=pltpu.CompilerParams(
            dimension_semantics=("parallel", "parallel", "arbitrary"),
            vmem_limit_bytes=48 * 1024 * 1024,  # explicit budget, safe on v7x 64 MiB
        ),
    )(xp, w_p, bp)
    return out[:M, :N]


# ------------------------------ conv as GEMM ------------------------------ #
def _im2col(x_nhwc, ksize=3, stride=2, pad=1):
    """Zero-FLOP layout glue: 3x3 / stride-2 patches in (kh, kw, c) order."""
    B, H, W, C = x_nhwc.shape
    OH = (H + 2 * pad - ksize) // stride + 1
    OW = (W + 2 * pad - ksize) // stride + 1
    xp = jnp.pad(x_nhwc, ((0, 0), (pad, pad), (pad, pad), (0, 0)))
    cols = []
    for kh in range(ksize):
        for kw in range(ksize):
            cols.append(xp[:, kh:kh + stride * OH:stride,
                           kw:kw + stride * OW:stride, :])
    patches = jnp.concatenate(cols, axis=-1)             # (B, OH, OW, 9*C)
    return patches.reshape(B * OH * OW, ksize * ksize * C), (B, OH, OW)


# ------------------------------- parameters ------------------------------- #
def _xavier_uniform(key, shape, fan_in, fan_out):
    limit = float((6.0 / (fan_in + fan_out)) ** 0.5)
    return jax.random.uniform(key, shape, jnp.float32, -limit, limit)


def _xavier_normal(key, shape, fan_in, fan_out):
    std = float((2.0 / (fan_in + fan_out)) ** 0.5)
    return std * jax.random.normal(key, shape, jnp.float32)


def _prep_gemm_weight(w_mat):
    """Pad a (K, N) GEMM weight to MXU-friendly (Kp, Np) and cast to bf16."""
    K, N = w_mat.shape
    Np = _round_up(N, 128)                     # lane-dense N
    Kp = _round_up(K, 16)                      # bf16 sublane packing
    if Kp > 1024:
        Kp = _round_up(Kp, 512)                # clean 512-wide K tiles
    return jnp.zeros((Kp, Np), jnp.bfloat16).at[:K, :N].set(
        w_mat.astype(jnp.bfloat16))


def init_params(key, *, n_channels, n_kernels, n_layers, emb_size, output_size,
                hidden=1024):
    feat_size = (emb_size - 1) // 2 ** n_layers + 1
    feat_dim = feat_size ** 2 * n_kernels
    out_chans = [n_kernels // 2 ** (n_layers - 1 - i) for i in range(n_layers)]
    in_chans = [n_channels] + out_chans[:-1]

    params = {"conv": []}
    for i in range(n_layers):
        key, kw_ = jax.random.split(key)
        cin, cout = in_chans[i], out_chans[i]
        w = _xavier_uniform(kw_, (cout, cin, 3, 3), cin * 9, cout * 9)
        # (OC,C,KH,KW) -> (KH,KW,C,OC) -> (9*C, OC): matches im2col column order.
        w_mat = jnp.transpose(w, (2, 3, 1, 0)).reshape(9 * cin, cout)
        params["conv"].append({"w": _prep_gemm_weight(w_mat),
                               "b": jnp.zeros((cout,), jnp.float32)})

    key, k1, k2 = jax.random.split(key, 3)
    dec_w = _xavier_uniform(k1, (feat_dim, hidden), feat_dim, hidden)
    # One-time row permutation (C,H,W) -> (H,W,C) so the forward pass can
    # flatten the NHWC conv output directly (no per-forward transpose).
    perm = (jnp.arange(feat_dim)
            .reshape(n_kernels, feat_size, feat_size)
            .transpose(1, 2, 0).reshape(-1))
    params["dec_w"] = _prep_gemm_weight(dec_w[perm])
    params["dec_b"] = jnp.zeros((hidden,), jnp.float32)

    fc_w = _xavier_normal(k2, (hidden, output_size), hidden, output_size)
    params["fc_w"] = _prep_gemm_weight(fc_w)
    params["fc_b"] = jnp.zeros((output_size,), jnp.float32)  # fc_out.bias.fill_(0)
    return params, feat_dim


# -------------------------------- forward --------------------------------- #
@jax.jit
def cnn2d_forward(params, x_nchw):
    n_layers = len(params["conv"])
    x = jnp.transpose(x_nchw, (0, 2, 3, 1))                 # NCHW -> NHWC once
    for i, layer in enumerate(params["conv"]):
        patches, (B, OH, OW) = _im2col(x)
        oc = layer["b"].shape[0]
        y = matmul_bias_act(patches, layer["w"], layer["b"],
                            leaky=(i != n_layers - 1))      # last conv: no act
        x = y.reshape(B, OH, OW, oc)
    # TODO(synk): nn.Dropout(p=0.5) is stochastic in train mode; modeled as
    # eval-mode identity here.
    bsz = x.shape[0]
    x = x.reshape(bsz, -1)  # NHWC flatten; dec_w rows were permuted to match
    x = matmul_bias_act(x, params["dec_w"], params["dec_b"], leaky=True)   # dec_net
    x = matmul_bias_act(x, params["fc_w"], params["fc_b"], leaky=False)    # fc_out
    return x


if __name__ == "__main__":
    # Small config consistent with the module: n_layers=3, n_kernels=16, emb=16.
    B, n_channels, n_kernels, n_layers, emb_size, output_size = 2, 1, 16, 3, 16, 10
    key = jax.random.PRNGKey(0)
    key, kx = jax.random.split(key)
    x = jax.random.normal(kx, (B, n_channels, emb_size, emb_size), jnp.float32)
    params, feat_dim = init_params(
        key, n_channels=n_channels, n_kernels=n_kernels, n_layers=n_layers,
        emb_size=emb_size, output_size=output_size)
    out = jax.block_until_ready(cnn2d_forward(params, x))
    assert out.shape == (B, output_size) and out.dtype == jnp.float32
    print("KERNEL_OK")
</pallas_src>

<mosaic_0001>
module attributes {stable_mosaic.version = 11 : i64} {
  func.func @_mm_bias_act_kernel(%arg0: i32, %arg1: i32, %arg2: i32, %arg3: memref<128x16xbf16, #tpu.memory_space<vmem>>, %arg4: memref<16x128xbf16, #tpu.memory_space<vmem>>, %arg5: memref<1x128xf32, #tpu.memory_space<vmem>>, %arg6: memref<128x128xf32, #tpu.memory_space<vmem>>, %arg7: memref<128x128xf32, #tpu.memory_space<vmem>>) attributes {dimension_semantics = [#tpu.dimension_semantics<parallel>, #tpu.dimension_semantics<parallel>, #tpu.dimension_semantics<arbitrary>], iteration_bounds = array<i64: 1, 1, 1>, scalar_prefetch = 0 : i64, scratch_operands = 1 : i64, tpu.core_type = #tpu.core_type<tc>, window_params = [{transform_indices = @transform_0, window_bounds = array<i64: 128, 16>}, {transform_indices = @transform_1, window_bounds = array<i64: 16, 128>}, {transform_indices = @transform_2, window_bounds = array<i64: 1, 128>}, {transform_indices = @transform_3, window_bounds = array<i64: 128, 128>}]} {
    %c0_i32 = arith.constant 0 : i32
    %0 = arith.cmpi eq, %arg2, %c0_i32 : i32
    %1 = arith.extui %0 : i1 to i32
    %c0_i32_0 = arith.constant 0 : i32
    %2 = arith.cmpi ne, %1, %c0_i32_0 : i32
    scf.if %2 {
      %cst_10 = arith.constant 0.000000e+00 : f32
      %12 = vector.broadcast %cst_10 : f32 to vector<128x128xf32>
      %c0_11 = arith.constant 0 : index
      %c0_12 = arith.constant 0 : index
      %13 = vector.load %arg7[%c0_11, %c0_12] : memref<128x128xf32, #tpu.memory_space<vmem>>, vector<128x128xf32>
      tpu.vector_store %arg7[%c0_11, %c0_12], %12 {strides = array<i32>} : memref<128x128xf32, #tpu.memory_space<vmem>>, vector<128x128xf32>,
    } else {
    }
    %c0 = arith.constant 0 : index
    %c0_1 = arith.constant 0 : index
    %3 = vector.load %arg7[%c0, %c0_1] : memref<128x128xf32, #tpu.memory_space<vmem>>, vector<128x128xf32>
    %c0_2 = arith.constant 0 : index
    %c0_3 = arith.constant 0 : index
    %4 = vector.load %arg3[%c0_2, %c0_3] : memref<128x16xbf16, #tpu.memory_space<vmem>>, vector<128x16xbf16>
    %c0_4 = arith.constant 0 : index
    %c0_5 = arith.constant 0 : index
    %5 = vector.load %arg4[%c0_4, %c0_5] : memref<16x128xbf16, #tpu.memory_space<vmem>>, vector<16x128xbf16>
    %cst = arith.constant dense<0.000000e+00> : vector<128x128xf32>
    %6 = tpu.matmul %4, %5, %cst {dimension_numbers = #tpu.dot_dimension_numbers<[1], [0], [0], [1], [0, 0, 1, 1], [], []>} : vector<128x16xbf16>, vector<16x128xbf16>, vector<128x128xf32> -> vector<128x128xf32>
    %7 = arith.addf %3, %6 : vector<128x128xf32>
    %c0_6 = arith.constant 0 : index
    %c0_7 = arith.constant 0 : index
    %8 = vector.load %arg7[%c0_6, %c0_7] : memref<128x128xf32, #tpu.memory_space<vmem>>, vector<128x128xf32>
    tpu.vector_store %arg7[%c0_6, %c0_7], %7 {strides = array<i32>} : memref<128x128xf32, #tpu.memory_space<vmem>>, vector<128x128xf32>,
    %c0_i32_8 = arith.constant 0 : i32
    %9 = arith.cmpi eq, %arg2, %c0_i32_8 : i32
    %10 = arith.extui %9 : i1 to i32
    %c0_i32_9 = arith.constant 0 : i32
    %11 = arith.cmpi ne, %10, %c0_i32_9 : i32
    scf.if %11 {
      %c0_10 = arith.constant 0 : index
      %c0_11 = arith.constant 0 : index
      %12 = vector.load %arg7[%c0_10, %c0_11] : memref<128x128xf32, #tpu.memory_space<vmem>>, vector<128x128xf32>
      %c0_12 = arith.constant 0 : index
      %c0_13 = arith.constant 0 : index
      %13 = vector.load %arg5[%c0_12, %c0_13] : memref<1x128xf32, #tpu.memory_space<vmem>>, vector<1x128xf32>
      %14 = vector.broadcast %13 : vector<1x128xf32> to vector<128x128xf32>
      %15 = arith.addf %12, %14 : vector<128x128xf32>
      %cst_14 = arith.constant 0.000000e+00 : f32
      %16 = vector.broadcast %cst_14 : f32 to vector<128x128xf32>
      %17 = arith.cmpf oge, %15, %16 : vector<128x128xf32>
      %cst_15 = arith.constant 0.00999999977 : f32
      %18 = vector.broadcast %cst_15 : f32 to vector<128x128xf32>
      %19 = arith.mulf %18, %15 : vector<128x128xf32>
      %20 = arith.select %17, %15, %19 : vector<128x128xi1>, vector<128x128xf32>
      %c0_16 = arith.constant 0 : index
      %c0_17 = arith.constant 0 : index
      %21 = vector.load %arg6[%c0_16, %c0_17] : memref<128x128xf32, #tpu.memory_space<vmem>>, vector<128x128xf32>
      tpu.vector_store %arg6[%c0_16, %c0_17], %20 {strides = array<i32>} : memref<128x128xf32, #tpu.memory_space<vmem>>, vector<128x128xf32>,
    } else {
    }
    return
  }
  func.func @transform_0(%arg0: i32, %arg1: i32, %arg2: i32) -> (i32, i32) {
    %c0_i32 = arith.constant 0 : i32
    return %arg0, %arg2 : i32, i32
  }
  func.func @transform_1(%arg0: i32, %arg1: i32, %arg2: i32) -> (i32, i32) {
    %c0_i32 = arith.constant 0 : i32
    return %arg2, %arg1 : i32, i32
  }
  func.func @transform_2(%arg0: i32, %arg1: i32, %arg2: i32) -> (i32, i32) {
    %c0_i32 = arith.constant 0 : i32
    %c0_i32_0 = arith.constant 0 : i32
    return %c0_i32, %arg1 : i32, i32
  }
  func.func @transform_3(%arg0: i32, %arg1: i32, %arg2: i32) -> (i32, i32) {
    %c0_i32 = arith.constant 0 : i32
    return %arg0, %arg1 : i32, i32
  }
}

module attributes {stable_mosaic.version = 11 : i64} {
  func.func @_mm_bias_act_kernel(%arg0: i32, %arg1: i32, %arg2: i32, %arg3: memref<32x48xbf16, #tpu.memory_space<vmem>>, %arg4: memref<48x128xbf16, #tpu.memory_space<vmem>>, %arg5: memref<1x128xf32, #tpu.memory_space<vmem>>, %arg6: memref<32x128xf32, #tpu.memory_space<vmem>>, %arg7: memref<32x128xf32, #tpu.memory_space<vmem>>) attributes {dimension_semantics = [#tpu.dimension_semantics<parallel>, #tpu.dimension_semantics<parallel>, #tpu.dimension_semantics<arbitrary>], iteration_bounds = array<i64: 1, 1, 1>, scalar_prefetch = 0 : i64, scratch_operands = 1 : i64, tpu.core_type = #tpu.core_type<tc>, window_params = [{transform_indices = @transform_0, window_bounds = array<i64: 32, 48>}, {transform_indices = @transform_1, window_bounds = array<i64: 48, 128>}, {transform_indices = @transform_2, window_bounds = array<i64: 1, 128>}, {transform_indices = @transform_3, window_bounds = array<i64: 32, 128>}]} {
    %c0_i32 = arith.constant 0 : i32
    %0 = arith.cmpi eq, %arg2, %c0_i32 : i32
    %1 = arith.extui %0 : i1 to i32
    %c0_i32_0 = arith.constant 0 : i32
    %2 = arith.cmpi ne, %1, %c0_i32_0 : i32
    scf.if %2 {
      %cst_10 = arith.constant 0.000000e+00 : f32
      %12 = vector.broadcast %cst_10 : f32 to vector<32x128xf32>
      %c0_11 = arith.constant 0 : index
      %c0_12 = arith.constant 0 : index
      %13 = vector.load %arg7[%c0_11, %c0_12] : memref<32x128xf32, #tpu.memory_space<vmem>>, vector<32x128xf32>
      tpu.vector_store %arg7[%c0_11, %c0_12], %12 {strides = array<i32>} : memref<32x128xf32, #tpu.memory_space<vmem>>, vector<32x128xf32>,
    } else {
    }
    %c0 = arith.constant 0 : index
    %c0_1 = arith.constant 0 : index
    %3 = vector.load %arg7[%c0, %c0_1] : memref<32x128xf32, #tpu.memory_space<vmem>>, vector<32x128xf32>
    %c0_2 = arith.constant 0 : index
    %c0_3 = arith.constant 0 : index
    %4 = vector.load %arg3[%c0_2, %c0_3] : memref<32x48xbf16, #tpu.memory_space<vmem>>, vector<32x48xbf16>
    %c0_4 = arith.constant 0 : index
    %c0_5 = arith.constant 0 : index
    %5 = vector.load %arg4[%c0_4, %c0_5] : memref<48x128xbf16, #tpu.memory_space<vmem>>, vector<48x128xbf16>
    %cst = arith.constant dense<0.000000e+00> : vector<32x128xf32>
    %6 = tpu.matmul %4, %5, %cst {dimension_numbers = #tpu.dot_dimension_numbers<[1], [0], [0], [1], [0, 0, 1, 1], [], []>} : vector<32x48xbf16>, vector<48x128xbf16>, vector<32x128xf32> -> vector<32x128xf32>
    %7 = arith.addf %3, %6 : vector<32x128xf32>
    %c0_6 = arith.constant 0 : index
    %c0_7 = arith.constant 0 : index
    %8 = vector.load %arg7[%c0_6, %c0_7] : memref<32x128xf32, #tpu.memory_space<vmem>>, vector<32x128xf32>
    tpu.vector_store %arg7[%c0_6, %c0_7], %7 {strides = array<i32>} : memref<32x128xf32, #tpu.memory_space<vmem>>, vector<32x128xf32>,
    %c0_i32_8 = arith.constant 0 : i32
    %9 = arith.cmpi eq, %arg2, %c0_i32_8 : i32
    %10 = arith.extui %9 : i1 to i32
    %c0_i32_9 = arith.constant 0 : i32
    %11 = arith.cmpi ne, %10, %c0_i32_9 : i32
    scf.if %11 {
      %c0_10 = arith.constant 0 : index
      %c0_11 = arith.constant 0 : index
      %12 = vector.load %arg7[%c0_10, %c0_11] : memref<32x128xf32, #tpu.memory_space<vmem>>, vector<32x128xf32>
      %c0_12 = arith.constant 0 : index
      %c0_13 = arith.constant 0 : index
      %13 = vector.load %arg5[%c0_12, %c0_13] : memref<1x128xf32, #tpu.memory_space<vmem>>, vector<1x128xf32>
      %14 = vector.broadcast %13 : vector<1x128xf32> to vector<32x128xf32>
      %15 = arith.addf %12, %14 : vector<32x128xf32>
      %cst_14 = arith.constant 0.000000e+00 : f32
      %16 = vector.broadcast %cst_14 : f32 to vector<32x128xf32>
      %17 = arith.cmpf oge, %15, %16 : vector<32x128xf32>
      %cst_15 = arith.constant 0.00999999977 : f32
      %18 = vector.broadcast %cst_15 : f32 to vector<32x128xf32>
      %19 = arith.mulf %18, %15 : vector<32x128xf32>
      %20 = arith.select %17, %15, %19 : vector<32x128xi1>, vector<32x128xf32>
      %c0_16 = arith.constant 0 : index
      %c0_17 = arith.constant 0 : index
      %21 = vector.load %arg6[%c0_16, %c0_17] : memref<32x128xf32, #tpu.memory_space<vmem>>, vector<32x128xf32>
      tpu.vector_store %arg6[%c0_16, %c0_17], %20 {strides = array<i32>} : memref<32x128xf32, #tpu.memory_space<vmem>>, vector<32x128xf32>,
    } else {
    }
    return
  }
  func.func @transform_0(%arg0: i32, %arg1: i32, %arg2: i32) -> (i32, i32) {
    %c0_i32 = arith.constant 0 : i32
    return %arg0, %arg2 : i32, i32
  }
  func.func @transform_1(%arg0: i32, %arg1: i32, %arg2: i32) -> (i32, i32) {
    %c0_i32 = arith.constant 0 : i32
    return %arg2, %arg1 : i32, i32
  }
  func.func @transform_2(%arg0: i32, %arg1: i32, %arg2: i32) -> (i32, i32) {
    %c0_i32 = arith.constant 0 : i32
    %c0_i32_0 = arith.constant 0 : i32
    return %c0_i32, %arg1 : i32, i32
  }
  func.func @transform_3(%arg0: i32, %arg1: i32, %arg2: i32) -> (i32, i32) {
    %c0_i32 = arith.constant 0 : i32
    return %arg0, %arg1 : i32, i32
  }
}

module attributes {stable_mosaic.version = 11 : i64} {
  func.func @_mm_bias_act_kernel(%arg0: i32, %arg1: i32, %arg2: i32, %arg3: memref<8x80xbf16, #tpu.memory_space<vmem>>, %arg4: memref<80x128xbf16, #tpu.memory_space<vmem>>, %arg5: memref<1x128xf32, #tpu.memory_space<vmem>>, %arg6: memref<8x128xf32, #tpu.memory_space<vmem>>, %arg7: memref<8x128xf32, #tpu.memory_space<vmem>>) attributes {dimension_semantics = [#tpu.dimension_semantics<parallel>, #tpu.dimension_semantics<parallel>, #tpu.dimension_semantics<arbitrary>], iteration_bounds = array<i64: 1, 1, 1>, scalar_prefetch = 0 : i64, scratch_operands = 1 : i64, tpu.core_type = #tpu.core_type<tc>, window_params = [{transform_indices = @transform_0, window_bounds = array<i64: 8, 80>}, {transform_indices = @transform_1, window_bounds = array<i64: 80, 128>}, {transform_indices = @transform_2, window_bounds = array<i64: 1, 128>}, {transform_indices = @transform_3, window_bounds = array<i64: 8, 128>}]} {
    %c0_i32 = arith.constant 0 : i32
    %0 = arith.cmpi eq, %arg2, %c0_i32 : i32
    %1 = arith.extui %0 : i1 to i32
    %c0_i32_0 = arith.constant 0 : i32
    %2 = arith.cmpi ne, %1, %c0_i32_0 : i32
    scf.if %2 {
      %cst_10 = arith.constant 0.000000e+00 : f32
      %12 = vector.broadcast %cst_10 : f32 to vector<8x128xf32>
      %c0_11 = arith.constant 0 : index
      %c0_12 = arith.constant 0 : index
      %13 = vector.load %arg7[%c0_11, %c0_12] : memref<8x128xf32, #tpu.memory_space<vmem>>, vector<8x128xf32>
      tpu.vector_store %arg7[%c0_11, %c0_12], %12 {strides = array<i32>} : memref<8x128xf32, #tpu.memory_space<vmem>>, vector<8x128xf32>,
    } else {
    }
    %c0 = arith.constant 0 : index
    %c0_1 = arith.constant 0 : index
    %3 = vector.load %arg7[%c0, %c0_1] : memref<8x128xf32, #tpu.memory_space<vmem>>, vector<8x128xf32>
    %c0_2 = arith.constant 0 : index
    %c0_3 = arith.constant 0 : index
    %4 = vector.load %arg3[%c0_2, %c0_3] : memref<8x80xbf16, #tpu.memory_space<vmem>>, vector<8x80xbf16>
    %c0_4 = arith.constant 0 : index
    %c0_5 = arith.constant 0 : index
    %5 = vector.load %arg4[%c0_4, %c0_5] : memref<80x128xbf16, #tpu.memory_space<vmem>>, vector<80x128xbf16>
    %cst = arith.constant dense<0.000000e+00> : vector<8x128xf32>
    %6 = tpu.matmul %4, %5, %cst {dimension_numbers = #tpu.dot_dimension_numbers<[1], [0], [0], [1], [0, 0, 1, 1], [], []>} : vector<8x80xbf16>, vector<80x128xbf16>, vector<8x128xf32> -> vector<8x128xf32>
    %7 = arith.addf %3, %6 : vector<8x128xf32>
    %c0_6 = arith.constant 0 : index
    %c0_7 = arith.constant 0 : index
    %8 = vector.load %arg7[%c0_6, %c0_7] : memref<8x128xf32, #tpu.memory_space<vmem>>, vector<8x128xf32>
    tpu.vector_store %arg7[%c0_6, %c0_7], %7 {strides = array<i32>} : memref<8x128xf32, #tpu.memory_space<vmem>>, vector<8x128xf32>,
    %c0_i32_8 = arith.constant 0 : i32
    %9 = arith.cmpi eq, %arg2, %c0_i32_8 : i32
    %10 = arith.extui %9 : i1 to i32
    %c0_i32_9 = arith.constant 0 : i32
    %11 = arith.cmpi ne, %10, %c0_i32_9 : i32
    scf.if %11 {
      %c0_10 = arith.constant 0 : index
      %c0_11 = arith.constant 0 : index
      %12 = vector.load %arg7[%c0_10, %c0_11] : memref<8x128xf32, #tpu.memory_space<vmem>>, vector<8x128xf32>
      %c0_12 = arith.constant 0 : index
      %c0_13 = arith.constant 0 : index
      %13 = vector.load %arg5[%c0_12, %c0_13] : memref<1x128xf32, #tpu.memory_space<vmem>>, vector<1x128xf32>
      %14 = vector.broadcast %13 : vector<1x128xf32> to vector<8x128xf32>
      %15 = arith.addf %12, %14 : vector<8x128xf32>
      %c0_14 = arith.constant 0 : index
      %c0_15 = arith.constant 0 : index
      %16 = vector.load %arg6[%c0_14, %c0_15] : memref<8x128xf32, #tpu.memory_space<vmem>>, vector<8x128xf32>
      tpu.vector_store %arg6[%c0_14, %c0_15], %15 {strides = array<i32>} : memref<8x128xf32, #tpu.memory_space<vmem>>, vector<8x128xf32>,
    } else {
    }
    return
  }
  func.func @transform_0(%arg0: i32, %arg1: i32, %arg2: i32) -> (i32, i32) {
    %c0_i32 = arith.constant 0 : i32
    return %arg0, %arg2 : i32, i32
  }
  func.func @transform_1(%arg0: i32, %arg1: i32, %arg2: i32) -> (i32, i32) {
    %c0_i32 = arith.constant 0 : i32
    return %arg2, %arg1 : i32, i32
  }
  func.func @transform_2(%arg0: i32, %arg1: i32, %arg2: i32) -> (i32, i32) {
    %c0_i32 = arith.constant 0 : i32
    %c0_i32_0 = arith.constant 0 : i32
    return %c0_i32, %arg1 : i32, i32
  }
  func.func @transform_3(%arg0: i32, %arg1: i32, %arg2: i32) -> (i32, i32) {
    %c0_i32 = arith.constant 0 : i32
    return %arg0, %arg1 : i32, i32
  }
}

module attributes {stable_mosaic.version = 11 : i64} {
  func.func @_mm_bias_act_kernel(%arg0: i32, %arg1: i32, %arg2: i32, %arg3: memref<8x64xbf16, #tpu.memory_space<vmem>>, %arg4: memref<64x256xbf16, #tpu.memory_space<vmem>>, %arg5: memref<1x256xf32, #tpu.memory_space<vmem>>, %arg6: memref<8x256xf32, #tpu.memory_space<vmem>>, %arg7: memref<8x256xf32, #tpu.memory_space<vmem>>) attributes {dimension_semantics = [#tpu.dimension_semantics<parallel>, #tpu.dimension_semantics<parallel>, #tpu.dimension_semantics<arbitrary>], iteration_bounds = array<i64: 1, 4, 1>, scalar_prefetch = 0 : i64, scratch_operands = 1 : i64, tpu.core_type = #tpu.core_type<tc>, window_params = [{transform_indices = @transform_0, window_bounds = array<i64: 8, 64>}, {transform_indices = @transform_1, window_bounds = array<i64: 64, 256>}, {transform_indices = @transform_2, window_bounds = array<i64: 1, 256>}, {transform_indices = @transform_3, window_bounds = array<i64: 8, 256>}]} {
    %c0_i32 = arith.constant 0 : i32
    %0 = arith.cmpi eq, %arg2, %c0_i32 : i32
    %1 = arith.extui %0 : i1 to i32
    %c0_i32_0 = arith.constant 0 : i32
    %2 = arith.cmpi ne, %1, %c0_i32_0 : i32
    scf.if %2 {
      %cst_10 = arith.constant 0.000000e+00 : f32
      %12 = vector.broadcast %cst_10 : f32 to vector<8x256xf32>
      %c0_11 = arith.constant 0 : index
      %c0_12 = arith.constant 0 : index
      %13 = vector.load %arg7[%c0_11, %c0_12] : memref<8x256xf32, #tpu.memory_space<vmem>>, vector<8x256xf32>
      tpu.vector_store %arg7[%c0_11, %c0_12], %12 {strides = array<i32>} : memref<8x256xf32, #tpu.memory_space<vmem>>, vector<8x256xf32>,
    } else {
    }
    %c0 = arith.constant 0 : index
    %c0_1 = arith.constant 0 : index
    %3 = vector.load %arg7[%c0, %c0_1] : memref<8x256xf32, #tpu.memory_space<vmem>>, vector<8x256xf32>
    %c0_2 = arith.constant 0 : index
    %c0_3 = arith.constant 0 : index
    %4 = vector.load %arg3[%c0_2, %c0_3] : memref<8x64xbf16, #tpu.memory_space<vmem>>, vector<8x64xbf16>
    %c0_4 = arith.constant 0 : index
    %c0_5 = arith.constant 0 : index
    %5 = vector.load %arg4[%c0_4, %c0_5] : memref<64x256xbf16, #tpu.memory_space<vmem>>, vector<64x256xbf16>
    %cst = arith.constant dense<0.000000e+00> : vector<8x256xf32>
    %6 = tpu.matmul %4, %5, %cst {dimension_numbers = #tpu.dot_dimension_numbers<[1], [0], [0], [1], [0, 0, 1, 1], [], []>} : vector<8x64xbf16>, vector<64x256xbf16>, vector<8x256xf32> -> vector<8x256xf32>
    %7 = arith.addf %3, %6 : vector<8x256xf32>
    %c0_6 = arith.constant 0 : index
    %c0_7 = arith.constant 0 : index
    %8 = vector.load %arg7[%c0_6, %c0_7] : memref<8x256xf32, #tpu.memory_space<vmem>>, vector<8x256xf32>
    tpu.vector_store %arg7[%c0_6, %c0_7], %7 {strides = array<i32>} : memref<8x256xf32, #tpu.memory_space<vmem>>, vector<8x256xf32>,
    %c0_i32_8 = arith.constant 0 : i32
    %9 = arith.cmpi eq, %arg2, %c0_i32_8 : i32
    %10 = arith.extui %9 : i1 to i32
    %c0_i32_9 = arith.constant 0 : i32
    %11 = arith.cmpi ne, %10, %c0_i32_9 : i32
    scf.if %11 {
      %c0_10 = arith.constant 0 : index
      %c0_11 = arith.constant 0 : index
      %12 = vector.load %arg7[%c0_10, %c0_11] : memref<8x256xf32, #tpu.memory_space<vmem>>, vector<8x256xf32>
      %c0_12 = arith.constant 0 : index
      %c0_13 = arith.constant 0 : index
      %13 = vector.load %arg5[%c0_12, %c0_13] : memref<1x256xf32, #tpu.memory_space<vmem>>, vector<1x256xf32>
      %14 = vector.broadcast %13 : vector<1x256xf32> to vector<8x256xf32>
      %15 = arith.addf %12, %14 : vector<8x256xf32>
      %cst_14 = arith.constant 0.000000e+00 : f32
      %16 = vector.broadcast %cst_14 : f32 to vector<8x256xf32>
      %17 = arith.cmpf oge, %15, %16 : vector<8x256xf32>
      %cst_15 = arith.constant 0.00999999977 : f32
      %18 = vector.broadcast %cst_15 : f32 to vector<8x256xf32>
      %19 = arith.mulf %18, %15 : vector<8x256xf32>
      %20 = arith.select %17, %15, %19 : vector<8x256xi1>, vector<8x256xf32>
      %c0_16 = arith.constant 0 : index
      %c0_17 = arith.constant 0 : index
      %21 = vector.load %arg6[%c0_16, %c0_17] : memref<8x256xf32, #tpu.memory_space<vmem>>, vector<8x256xf32>
      tpu.vector_store %arg6[%c0_16, %c0_17], %20 {strides = array<i32>} : memref<8x256xf32, #tpu.memory_space<vmem>>, vector<8x256xf32>,
    } else {
    }
    return
  }
  func.func @transform_0(%arg0: i32, %arg1: i32, %arg2: i32) -> (i32, i32) {
    %c0_i32 = arith.constant 0 : i32
    return %arg0, %arg2 : i32, i32
  }
  func.func @transform_1(%arg0: i32, %arg1: i32, %arg2: i32) -> (i32, i32) {
    %c0_i32 = arith.constant 0 : i32
    return %arg2, %arg1 : i32, i32
  }
  func.func @transform_2(%arg0: i32, %arg1: i32, %arg2: i32) -> (i32, i32) {
    %c0_i32 = arith.constant 0 : i32
    %c0_i32_0 = arith.constant 0 : i32
    return %c0_i32, %arg1 : i32, i32
  }
  func.func @transform_3(%arg0: i32, %arg1: i32, %arg2: i32) -> (i32, i32) {
    %c0_i32 = arith.constant 0 : i32
    return %arg0, %arg1 : i32, i32
  }
}

module attributes {stable_mosaic.version = 11 : i64} {
  func.func @_mm_bias_act_kernel(%arg0: i32, %arg1: i32, %arg2: i32, %arg3: memref<8x1024xbf16, #tpu.memory_space<vmem>>, %arg4: memref<1024x128xbf16, #tpu.memory_space<vmem>>, %arg5: memref<1x128xf32, #tpu.memory_space<vmem>>, %arg6: memref<8x128xf32, #tpu.memory_space<vmem>>, %arg7: memref<8x128xf32, #tpu.memory_space<vmem>>) attributes {dimension_semantics = [#tpu.dimension_semantics<parallel>, #tpu.dimension_semantics<parallel>, #tpu.dimension_semantics<arbitrary>], iteration_bounds = array<i64: 1, 1, 1>, scalar_prefetch = 0 : i64, scratch_operands = 1 : i64, tpu.core_type = #tpu.core_type<tc>, window_params = [{transform_indices = @transform_0, window_bounds = array<i64: 8, 1024>}, {transform_indices = @transform_1, window_bounds = array<i64: 1024, 128>}, {transform_indices = @transform_2, window_bounds = array<i64: 1, 128>}, {transform_indices = @transform_3, window_bounds = array<i64: 8, 128>}]} {
    %c0_i32 = arith.constant 0 : i32
    %0 = arith.cmpi eq, %arg2, %c0_i32 : i32
    %1 = arith.extui %0 : i1 to i32
    %c0_i32_0 = arith.constant 0 : i32
    %2 = arith.cmpi ne, %1, %c0_i32_0 : i32
    scf.if %2 {
      %cst_10 = arith.constant 0.000000e+00 : f32
      %12 = vector.broadcast %cst_10 : f32 to vector<8x128xf32>
      %c0_11 = arith.constant 0 : index
      %c0_12 = arith.constant 0 : index
      %13 = vector.load %arg7[%c0_11, %c0_12] : memref<8x128xf32, #tpu.memory_space<vmem>>, vector<8x128xf32>
      tpu.vector_store %arg7[%c0_11, %c0_12], %12 {strides = array<i32>} : memref<8x128xf32, #tpu.memory_space<vmem>>, vector<8x128xf32>,
    } else {
    }
    %c0 = arith.constant 0 : index
    %c0_1 = arith.constant 0 : index
    %3 = vector.load %arg7[%c0, %c0_1] : memref<8x128xf32, #tpu.memory_space<vmem>>, vector<8x128xf32>
    %c0_2 = arith.constant 0 : index
    %c0_3 = arith.constant 0 : index
    %4 = vector.load %arg3[%c0_2, %c0_3] : memref<8x1024xbf16, #tpu.memory_space<vmem>>, vector<8x1024xbf16>
    %c0_4 = arith.constant 0 : index
    %c0_5 = arith.constant 0 : index
    %5 = vector.load %arg4[%c0_4, %c0_5] : memref<1024x128xbf16, #tpu.memory_space<vmem>>, vector<1024x128xbf16>
    %cst = arith.constant dense<0.000000e+00> : vector<8x128xf32>
    %6 = tpu.matmul %4, %5, %cst {dimension_numbers = #tpu.dot_dimension_numbers<[1], [0], [0], [1], [0, 0, 1, 1], [], []>} : vector<8x1024xbf16>, vector<1024x128xbf16>, vector<8x128xf32> -> vector<8x128xf32>
    %7 = arith.addf %3, %6 : vector<8x128xf32>
    %c0_6 = arith.constant 0 : index
    %c0_7 = arith.constant 0 : index
    %8 = vector.load %arg7[%c0_6, %c0_7] : memref<8x128xf32, #tpu.memory_space<vmem>>, vector<8x128xf32>
    tpu.vector_store %arg7[%c0_6, %c0_7], %7 {strides = array<i32>} : memref<8x128xf32, #tpu.memory_space<vmem>>, vector<8x128xf32>,
    %c0_i32_8 = arith.constant 0 : i32
    %9 = arith.cmpi eq, %arg2, %c0_i32_8 : i32
    %10 = arith.extui %9 : i1 to i32
    %c0_i32_9 = arith.constant 0 : i32
    %11 = arith.cmpi ne, %10, %c0_i32_9 : i32
    scf.if %11 {
      %c0_10 = arith.constant 0 : index
      %c0_11 = arith.constant 0 : index
      %12 = vector.load %arg7[%c0_10, %c0_11] : memref<8x128xf32, #tpu.memory_space<vmem>>, vector<8x128xf32>
      %c0_12 = arith.constant 0 : index
      %c0_13 = arith.constant 0 : index
      %13 = vector.load %arg5[%c0_12, %c0_13] : memref<1x128xf32, #tpu.memory_space<vmem>>, vector<1x128xf32>
      %14 = vector.broadcast %13 : vector<1x128xf32> to vector<8x128xf32>
      %15 = arith.addf %12, %14 : vector<8x128xf32>
      %c0_14 = arith.constant 0 : index
      %c0_15 = arith.constant 0 : index
      %16 = vector.load %arg6[%c0_14, %c0_15] : memref<8x128xf32, #tpu.memory_space<vmem>>, vector<8x128xf32>
      tpu.vector_store %arg6[%c0_14, %c0_15], %15 {strides = array<i32>} : memref<8x128xf32, #tpu.memory_space<vmem>>, vector<8x128xf32>,
    } else {
    }
    return
  }
  func.func @transform_0(%arg0: i32, %arg1: i32, %arg2: i32) -> (i32, i32) {
    %c0_i32 = arith.constant 0 : i32
    return %arg0, %arg2 : i32, i32
  }
  func.func @transform_1(%arg0: i32, %arg1: i32, %arg2: i32) -> (i32, i32) {
    %c0_i32 = arith.constant 0 : i32
    return %arg2, %arg1 : i32, i32
  }
  func.func @transform_2(%arg0: i32, %arg1: i32, %arg2: i32) -> (i32, i32) {
    %c0_i32 = arith.constant 0 : i32
    %c0_i32_0 = arith.constant 0 : i32
    return %c0_i32, %arg1 : i32, i32
  }
  func.func @transform_3(%arg0: i32, %arg1: i32, %arg2: i32) -> (i32, i32) {
    %c0_i32 = arith.constant 0 : i32
    return %arg0, %arg1 : i32, i32
  }
}

</mosaic_0001>

<bundles_post_ra>
// kernel: cnn2d_forward.5
= control target key start
LH: loop header
LB: loop body
LE: loop exit
PB: predicated region body
PF: predicated region fallthrough
CT: control target
= control target key end

     0   :  { %vm115_vm0 = vcmask 130048   ;;  %s509_s1 = inlined_call_operand.vmem [shape: bf16[16,128], index: 1, kind: input, shape index: {}]   ;;  %s510_s0 = inlined_call_operand.vmem [shape: bf16[128,16], index: 0, kind: input, shape index: {}]   ;;  %s511_s2 = inlined_call_operand.vmem [shape: f32[1,128], index: 2, kind: input, shape index: {}]   ;;  %s512_s3 = inlined_call_operand.vmem [shape: f32[128,128], index: 3, kind: output, shape index: {}]  }
   0x1   :  { %v380_v0 = vld [vmem:[%s509_s1] sm:$0xff]  ;;  %v374_v2 = vld [vmem:[%s510_s0 + $0x10] sm:$0xff]  ;;  %v373_v5 = vld [vmem:[%s510_s0 + $0x8] sm:$0xff] }
   0x2   :  { %v372_v1 = vld [vmem:[%s510_s0] sm:$0xff]  ;;  %147 = vmatpush.bf16.msra.mxu0 %v380_v0  ;;  %381 = vmatpush.bf16.msra.mxu1 %v380_v0  ;;  %v378_v4 = vld [vmem:[%s510_s0 + $0x30] sm:$0xff]  ;;  %v375_v6 = vld [vmem:[%s510_s0 + $0x18] sm:$0xff] }
   0x3   :  { %v376_v3 = vld [vmem:[%s510_s0 + $0x20] sm:$0xff]  ;;  %382 = vmatpush.bf16.msra.mxu2 %v380_v0  ;;  %383 = vmatpush.bf16.msra.mxu3 %v380_v0  ;;  %v377_v7 = vld [vmem:[%s510_s0 + $0x28] sm:$0xff]  ;;  %v379_v8 = vld [vmem:[%s510_s0 + $0x38] sm:$0xff] }
   0x4   :  { %v443_v9 = vld [vmem:[%s511_s2] ss:$0 sm:$0xff] }
   0x5   :  { %364 = vmatmul.msk.bf16.vlgmr.msra.gmra.mxu0 %vm115_vm0, %v372_v1  ;;  %366 = vmatmul.msk.bf16.vlgmr.msra.gmra.mxu1 %vm115_vm0, %v374_v2 }
   0x6   :  { %368 = vmatmul.msk.bf16.vlgmr.msra.gmra.mxu2 %vm115_vm0, %v376_v3  ;;  %370 = vmatmul.msk.bf16.vlgmr.msra.gmra.mxu3 %vm115_vm0, %v378_v4 }
  0x15   :  { %365 = vmatmul.msk.bf16.gmra.mxu0 %vm115_vm0, %v373_v5  ;;  %367 = vmatmul.msk.bf16.gmra.mxu1 %vm115_vm0, %v375_v6 }
  0x16   :  { %369 = vmatmul.msk.bf16.gmra.mxu2 %vm115_vm0, %v377_v7  ;;  %371 = vmatmul.msk.bf16.gmra.mxu3 %vm115_vm0, %v379_v8 }
  0x82   :  { %v149_v10 = vpop.f32.mrf.mxu0  ;;  %v159_v11 = vpop.f32.mrf.mxu1 }
  0x83   :  { %v244_v12 = vadd.f32 %v443_v9, %v149_v10  ;;  %v248_v13 = vadd.f32 %v443_v9, %v159_v11 }
  0x85   :  { %vm260_vm1 = vcmp.ge.f32.partialorder %v244_v12, 0.0  ;;  %v276_v14 = vmul.f32 0.01, %v244_v12  ;;  %vm264_vm2 = vcmp.ge.f32.partialorder %v248_v13, 0.0  ;;  %v280_v15 = vmul.f32 0.01, %v248_v13 }
  0x87   :  { %v292_v16 = vsel %vm260_vm1, %v244_v12, %v276_v14  ;;  %v296_v17 = vsel %vm264_vm2, %v248_v13, %v280_v15 }
  0x88   :  { %308 = vst [vmem:[%s512_s3] sm:$0xff] %v292_v16 }
  0x89   :  { %312 = vst [vmem:[%s512_s3 + $0x20] sm:$0xff] %v296_v17  ;;  %v169_v18 = vpop.f32.mrf.mxu2  ;;  %v179_v19 = vpop.f32.mrf.mxu3 }
  0x8a   :  { %v252_v20 = vadd.f32 %v443_v9, %v169_v18  ;;  %v256_v21 = vadd.f32 %v443_v9, %v179_v19  ;;  %v151_v22 = vpop.f32.mrf.mxu0  ;;  %v161_v23 = vpop.f32.mrf.mxu1 }
  0x8b   :  { %v245_v24 = vadd.f32 %v443_v9, %v151_v22  ;;  %v249_v25 = vadd.f32 %v443_v9, %v161_v23 }
  0x8c   :  { %vm268_vm3 = vcmp.ge.f32.partialorder %v252_v20, 0.0  ;;  %v284_v26 = vmul.f32 0.01, %v252_v20  ;;  %vm272_vm4 = vcmp.ge.f32.partialorder %v256_v21, 0.0  ;;  %v288_v27 = vmul.f32 0.01, %v256_v21 }
  0x8d   :  { %vm261_vm5 = vcmp.ge.f32.partialorder %v245_v24, 0.0  ;;  %v277_v28 = vmul.f32 0.01, %v245_v24  ;;  %vm265_vm6 = vcmp.ge.f32.partialorder %v249_v25, 0.0  ;;  %v281_v29 = vmul.f32 0.01, %v249_v25 }
  0x8e   :  { %v300_v30 = vsel %vm268_vm3, %v252_v20, %v284_v26  ;;  %v304_v31 = vsel %vm272_vm4, %v256_v21, %v288_v27 }
  0x8f   :  { %316 = vst [vmem:[%s512_s3 + $0x40] sm:$0xff] %v300_v30  ;;  %v293_v32 = vsel %vm261_vm5, %v245_v24, %v277_v28  ;;  %v297_v33 = vsel %vm265_vm6, %v249_v25, %v281_v29 }
  0x90   :  { %320 = vst [vmem:[%s512_s3 + $0x60] sm:$0xff] %v304_v31 }
  0x91   :  { %309 = vst [vmem:[%s512_s3 + $0x8] sm:$0xff] %v293_v32  ;;  %v171_v34 = vpop.f32.mrf.mxu2  ;;  %v181_v35 = vpop.f32.mrf.mxu3 }
  0x92   :  { %313 = vst [vmem:[%s512_s3 + $0x28] sm:$0xff] %v297_v33  ;;  %v253_v36 = vadd.f32 %v443_v9, %v171_v34  ;;  %v257_v37 = vadd.f32 %v443_v9, %v181_v35  ;;  %v154_v38 = vpop.f32.mrf.mxu0  ;;  %v164_v39 = vpop.f32.mrf.mxu1 }
  0x93   :  { %v246_v40 = vadd.f32 %v443_v9, %v154_v38  ;;  %v250_v41 = vadd.f32 %v443_v9, %v164_v39 }
  0x94   :  { %vm269_vm7 = vcmp.ge.f32.partialorder %v253_v36, 0.0  ;;  %v285_v42 = vmul.f32 0.01, %v253_v36  ;;  %vm273_vm8 = vcmp.ge.f32.partialorder %v257_v37, 0.0  ;;  %v289_v43 = vmul.f32 0.01, %v257_v37 }
  0x95   :  { %vm262_vm9 = vcmp.ge.f32.partialorder %v246_v40, 0.0  ;;  %v278_v44 = vmul.f32 0.01, %v246_v40  ;;  %vm266_vm10 = vcmp.ge.f32.partialorder %v250_v41, 0.0  ;;  %v282_v45 = vmul.f32 0.01, %v250_v41 }
  0x96   :  { %v301_v46 = vsel %vm269_vm7, %v253_v36, %v285_v42  ;;  %v305_v47 = vsel %vm273_vm8, %v257_v37, %v289_v43 }
  0x97   :  { %317 = vst [vmem:[%s512_s3 + $0x48] sm:$0xff] %v301_v46  ;;  %v294_v48 = vsel %vm262_vm9, %v246_v40, %v278_v44  ;;  %v298_v49 = vsel %vm266_vm10, %v250_v41, %v282_v45 }
  0x98   :  { %321 = vst [vmem:[%s512_s3 + $0x68] sm:$0xff] %v305_v47 }
  0x99   :  { %310 = vst [vmem:[%s512_s3 + $0x10] sm:$0xff] %v294_v48  ;;  %v174_v50 = vpop.f32.mrf.mxu2  ;;  %v184_v51 = vpop.f32.mrf.mxu3 }
  0x9a   :  { %314 = vst [vmem:[%s512_s3 + $0x30] sm:$0xff] %v298_v49  ;;  %v254_v52 = vadd.f32 %v443_v9, %v174_v50  ;;  %v258_v53 = vadd.f32 %v443_v9, %v184_v51  ;;  %v156_v54 = vpop.f32.mrf.mxu0  ;;  %v166_v55 = vpop.f32.mrf.mxu1 }
  0x9b   :  { %v247_v56 = vadd.f32 %v443_v9, %v156_v54  ;;  %v251_v57 = vadd.f32 %v443_v9, %v166_v55 }
  0x9c   :  { %vm270_vm11 = vcmp.ge.f32.partialorder %v254_v52, 0.0  ;;  %v286_v58 = vmul.f32 0.01, %v254_v52  ;;  %vm274_vm12 = vcmp.ge.f32.partialorder %v258_v53, 0.0  ;;  %v290_v59 = vmul.f32 0.01, %v258_v53 }
  0x9d   :  { %vm263_vm13 = vcmp.ge.f32.partialorder %v247_v56, 0.0  ;;  %v279_v60 = vmul.f32 0.01, %v247_v56  ;;  %vm267_vm14 = vcmp.ge.f32.partialorder %v251_v57, 0.0  ;;  %v283_v61 = vmul.f32 0.01, %v251_v57 }
  0x9e   :  { %v302_v62 = vsel %vm270_vm11, %v254_v52, %v286_v58  ;;  %v306_v63 = vsel %vm274_vm12, %v258_v53, %v290_v59 }
  0x9f   :  { %318 = vst [vmem:[%s512_s3 + $0x50] sm:$0xff] %v302_v62  ;;  %v295_v0 = vsel %vm263_vm13, %v247_v56, %v279_v60  ;;  %v299_v1 = vsel %vm267_vm14, %v251_v57, %v283_v61 }
  0xa0   :  { %322 = vst [vmem:[%s512_s3 + $0x70] sm:$0xff] %v306_v63 }
  0xa1   :  { %311 = vst [vmem:[%s512_s3 + $0x18] sm:$0xff] %v295_v0  ;;  %v176_v2 = vpop.f32.mrf.mxu2  ;;  %v186_v3 = vpop.f32.mrf.mxu3 }
  0xa2   :  { %315 = vst [vmem:[%s512_s3 + $0x38] sm:$0xff] %v299_v1  ;;  %v255_v4 = vadd.f32 %v443_v9, %v176_v2  ;;  %v259_v5 = vadd.f32 %v443_v9, %v186_v3 }
  0xa4   :  { %vm271_vm15 = vcmp.ge.f32.partialorder %v255_v4, 0.0  ;;  %v287_v6 = vmul.f32 0.01, %v255_v4  ;;  %vm275_vm0 = vcmp.ge.f32.partialorder %v259_v5, 0.0  ;;  %v291_v7 = vmul.f32 0.01, %v259_v5 }
  0xa6   :  { %v303_v8 = vsel %vm271_vm15, %v255_v4, %v287_v6  ;;  %v307_v10 = vsel %vm275_vm0, %v259_v5, %v291_v7 }
  0xa7   :  { %319 = vst [vmem:[%s512_s3 + $0x58] sm:$0xff] %v303_v8 }
  0xa8   :  { %323 = vst [vmem:[%s512_s3 + $0x78] sm:$0xff] %v307_v10 }

// kernel: cnn2d_forward.6
= control target key start
LH: loop header
LB: loop body
LE: loop exit
PB: predicated region body
PF: predicated region fallthrough
CT: control target
= control target key end

     0   :  { %vm65_vm0 = vcmask 392192   ;;  %s215_s1 = inlined_call_operand.vmem [shape: bf16[48,128], index: 1, kind: input, shape index: {}]   ;;  %s216_s2 = inlined_call_operand.vmem [shape: f32[1,128], index: 2, kind: input, shape index: {}]   ;;  %s217_s0 = inlined_call_operand.vmem [shape: bf16[32,48], index: 0, kind: input, shape index: {}]   ;;  %s218_s3 = inlined_call_operand.vmem [shape: f32[32,128], index: 3, kind: output, shape index: {}]  }
   0x1   :  { %v160_v0 = vld [vmem:[%s215_s1 + $0x10] sm:$0xff]  ;;  %v159_v1 = vld [vmem:[%s215_s1 + $0x8] sm:$0xff]  ;;  %v158_v2 = vld [vmem:[%s215_s1] sm:$0xff] }
   0x2   :  { %77 = vmatpush.bf16.msra.mxu0 %v160_v0  ;;  %161 = vmatpush.bf16.msra.mxu1 %v160_v0  ;;  %v156_v3 = vld [vmem:[%s217_s0] sm:$0xff]  ;;  %v157_v4 = vld [vmem:[%s217_s0 + $0x8] sm:$0xff] }
   0x3   :  { %v164_v5 = vld [vmem:[%s216_s2] ss:$0 sm:$0xff] }
   0x6   :  { %78 = vmatpush.bf16.msra.mxu0 %v159_v1  ;;  %162 = vmatpush.bf16.msra.mxu1 %v159_v1 }
   0xa   :  { %79 = vmatpush.bf16.msra.mxu0 %v158_v2  ;;  %163 = vmatpush.bf16.msra.mxu1 %v158_v2 }
   0xd   :  { %154 = vmatmul.msk.bf16.vlgmr.msra.gmra.mxu0 %vm65_vm0, %v156_v3  ;;  %155 = vmatmul.msk.bf16.vlgmr.msra.gmra.mxu1 %vm65_vm0, %v157_v4 }
  0x8a   :  { %v81_v6 = vpop.f32.mrf.mxu0  ;;  %v86_v7 = vpop.f32.mrf.mxu1 }
  0x8b   :  { %v110_v8 = vadd.f32 %v164_v5, %v81_v6  ;;  %v112_v9 = vadd.f32 %v164_v5, %v86_v7 }
  0x8d   :  { %vm114_vm1 = vcmp.ge.f32.partialorder %v110_v8, 0.0  ;;  %v118_v10 = vmul.f32 0.01, %v110_v8  ;;  %vm116_vm2 = vcmp.ge.f32.partialorder %v112_v9, 0.0  ;;  %v120_v11 = vmul.f32 0.01, %v112_v9 }
  0x8f   :  { %v122_v12 = vsel %vm114_vm1, %v110_v8, %v118_v10  ;;  %v124_v13 = vsel %vm116_vm2, %v112_v9, %v120_v11 }
  0x90   :  { %126 = vst [vmem:[%s218_s3] sm:$0xff] %v122_v12 }
  0x91   :  { %128 = vst [vmem:[%s218_s3 + $0x10] sm:$0xff] %v124_v13 }
  0x92   :  { %v83_v14 = vpop.f32.mrf.mxu0  ;;  %v88_v15 = vpop.f32.mrf.mxu1 }
  0x93   :  { %v111_v16 = vadd.f32 %v164_v5, %v83_v14  ;;  %v113_v17 = vadd.f32 %v164_v5, %v88_v15 }
  0x95   :  { %vm115_vm3 = vcmp.ge.f32.partialorder %v111_v16, 0.0  ;;  %v119_v18 = vmul.f32 0.01, %v111_v16  ;;  %vm117_vm4 = vcmp.ge.f32.partialorder %v113_v17, 0.0  ;;  %v121_v19 = vmul.f32 0.01, %v113_v17 }
  0x97   :  { %v123_v20 = vsel %vm115_vm3, %v111_v16, %v119_v18  ;;  %v125_v21 = vsel %vm117_vm4, %v113_v17, %v121_v19 }
  0x98   :  { %127 = vst [vmem:[%s218_s3 + $0x8] sm:$0xff] %v123_v20 }
  0x99   :  { %129 = vst [vmem:[%s218_s3 + $0x18] sm:$0xff] %v125_v21 }

// kernel: cnn2d_forward.7
= control target key start
LH: loop header
LB: loop body
LE: loop exit
PB: predicated region body
PF: predicated region fallthrough
CT: control target
= control target key end

     0   :  { %vm62_vm0 = vcmask 654336   ;;  %s166_s1 = inlined_call_operand.vmem [shape: bf16[80,128], index: 1, kind: input, shape index: {}]   ;;  %s167_s2 = inlined_call_operand.vmem [shape: f32[1,128], index: 2, kind: input, shape index: {}]   ;;  %s168_s0 = inlined_call_operand.vmem [shape: bf16[8,80], index: 0, kind: input, shape index: {}]   ;;  %s169_s3 = inlined_call_operand.vmem [shape: f32[8,128], index: 3, kind: output, shape index: {}]  }
   0x1   :  { %v120_v0 = vld [vmem:[%s166_s1 + $0x20] sm:$0xff]  ;;  %v119_v1 = vld [vmem:[%s166_s1 + $0x18] sm:$0xff]  ;;  %v118_v2 = vld [vmem:[%s166_s1 + $0x10] sm:$0xff] }
   0x2   :  { %69 = vmatpush.bf16.msra.mxu0 %v120_v0  ;;  %v117_v3 = vld [vmem:[%s166_s1 + $0x8] sm:$0xff]  ;;  %v116_v4 = vld [vmem:[%s166_s1] sm:$0xff] }
   0x3   :  { %v21_v5 = vld [vmem:[%s168_s0] sm:$0xf] }
   0x4   :  { %v121_v6 = vld [vmem:[%s167_s2] ss:$0 sm:$0xff] }
   0x6   :  { %70 = vmatpush.bf16.msra.mxu0 %v119_v1 }
   0xa   :  { %71 = vmatpush.bf16.msra.mxu0 %v118_v2 }
   0xe   :  { %72 = vmatpush.bf16.msra.mxu0 %v117_v3 }
  0x12   :  { %73 = vmatpush.bf16.msra.mxu0 %v116_v4 }
  0x15   :  { %115 = vmatmul.msk.bf16.vlgmr.msra.gmra.mxu0 %vm62_vm0, %v21_v5 }
  0x92   :  { %v75_v7 = vpop.f32.mrf.mxu0 }
  0x93   :  { %v89_v8 = vadd.f32 %v121_v6, %v75_v7 }
  0x95   :  { %90 = vst [vmem:[%s169_s3] sm:$0xff] %v89_v8 }
  0x9a   :  { %v77_v9 = vpop.f32.mrf.mxu0 }

// kernel: cnn2d_forward.8
= control target key start
LH: loop header
LB: loop body
LE: loop exit
PB: predicated region body
PF: predicated region fallthrough
CT: control target
= control target key end

     0   :  { %s710_s12 = smov 0   ;;  %s712_s13 = smov 0   ;;  %s781_s0 = inlined_call_operand.vmem [shape: bf16[8,64], index: 0, kind: input, shape index: {}]   ;;  %s782_s1 = inlined_call_operand.vmem [shape: bf16[64,1024], index: 1, kind: input, shape index: {}]   ;;  %s783_s2 = inlined_call_operand.vmem [shape: f32[1,1024], index: 2, kind: input, shape index: {}]   ;;  %s784_s3 = inlined_call_operand.vmem [shape: f32[8,1024], index: 3, kind: output, shape index: {}]  }
   0x1   :  { %s714_s14 = smov 0   ;;  %s716_s15 = smov 0  }
   0x2   :  { %s718_s16 = smov 0  }
   0x3 LB: > { %s28_s17 = sadd.s32 1, %s684_s15  ;;  %p76_p1 = scmp.ne.s32.totalorder %s676_s13, %s672_s12  ;;  %s688_s16 = sphi %s718_s16, %s13_s16   ;;  %s684_s15 = sphi %s716_s15, %s788_s15   ;;  %s680_s14 = sphi %s714_s14, %s787_s14   ;;  %s676_s13 = sphi %s712_s13, %s786_s13   ;;  %s672_s12 = sphi %s710_s12, %s785_s12  }
   0x4   : > { %p30_p0 = scmp.ge.s32.totalorder %s28_s17, 4  ;;  %p77_p2 = scmp.eq.s32.totalorder %s688_s16, 0 }
   0x5   : > { %s69_s19 = sadd.s32 1, %s676_s13  ;;  %p556_p5 = scmp.ge.s32.totalorder %s688_s16, 4 }
   0x6   : > { %s790_s17 = smov (%p30_p0, %s28_s17), 0  ;;  %p78_p3 = por %p77_p2, %p76_p1 }
   0x7   : > { %s65_s18 = ssub.s32 %s684_s15, %s790_s17  ;;  %166 = sbr.rel (%p556_p5) target bundleno = 24 (0x18), region = 20 }
   0x8   : > { %p67_p4 = scmp.eq.s32.totalorder %s65_s18, 0 }
   0xa   : > { %s745_s20 = scalar_select %p67_p4, %s676_s13, %s69_s19  }
   0xc   : > { %169 = sbr.rel (!%p78_p3) target bundleno = 24 (0x18), region = 24  ;;  %s171_s21 = sand.u32 (%p78_p3), 1, %s676_s13  }
   0xd   : > { %s601_s22 = sshll.u32 (%p78_p3), %s684_s15, 3  ;;  %s557_s23 = sshll.u32 (%p78_p3), %s171_s21, 6 }
   0xe   : > { %s179_s26 = scalar_lea.vmem (%p78_p3), %s782_s1, %s601_s22  ;;  %s173_s27 = scalar_lea.vmem (%p78_p3), [#allocation3], %s557_s23 }
   0xf   : > { %v222_v0 = vld [vmem:[%s179_s26] sm:$0xff] (%p78_p3) }
  0x10   : > { %v224_v1 = vld [vmem:[%s179_s26 + $0x20] sm:$0xff] (%p78_p3)  ;;  %223 = vst [vmem:[%s173_s27] sm:$0xff] (%p78_p3), %v222_v0 }
  0x11   : > { %v226_v2 = vld [vmem:[%s179_s26 + $0x40] sm:$0xff]  ;;  %225 = vst [vmem:[%s173_s27 + $0x8] sm:$0xff] %v224_v1 }
  0x12   : > { %v228_v3 = vld [vmem:[%s179_s26 + $0x60] sm:$0xff]  ;;  %227 = vst [vmem:[%s173_s27 + $0x10] sm:$0xff] %v226_v2 }
  0x13   : > { %v230_v4 = vld [vmem:[%s179_s26 + $0x80] sm:$0xff]  ;;  %229 = vst [vmem:[%s173_s27 + $0x18] sm:$0xff] %v228_v3 }
  0x14   : > { %v232_v5 = vld [vmem:[%s179_s26 + $0xa0] sm:$0xff]  ;;  %231 = vst [vmem:[%s173_s27 + $0x20] sm:$0xff] %v230_v4 }
  0x15   : > { %v234_v6 = vld [vmem:[%s179_s26 + $0xc0] sm:$0xff]  ;;  %233 = vst [vmem:[%s173_s27 + $0x28] sm:$0xff] %v232_v5 }
  0x16   : > { %v236_v7 = vld [vmem:[%s179_s26 + $0xe0] sm:$0xff]  ;;  %235 = vst [vmem:[%s173_s27 + $0x30] sm:$0xff] %v234_v6 }
  0x17   : > { %237 = vst [vmem:[%s173_s27 + $0x38] sm:$0xff] %v236_v7 }
  0x18 PF: > { %p560_p6 = scmp.ge.s32.totalorder %s688_s16, 1  ;;  %p250_p7 = scmp.lt.s32.totalorder %s688_s16, 5 }
  0x1a   : > { %p251_p8 = pnand %p560_p6, %p250_p7 }
  0x1b   : > { %s257_s28 = sand.u32 (!%p251_p8), 1, %s672_s12   ;;  %s562_s6 = sshll.u32 (!%p251_p8), %s680_s14, 1 }
  0x1c   : > { %254 = sbr.rel (%p251_p8) target bundleno = 186 (0xba), region = 66  ;;  %s561_s29 = sshll.u32 (!%p251_p8), %s257_s28, 6 }
  0x1d   : > { %s259_s30 = scalar_lea.vmem (!%p251_p8), [#allocation3], %s561_s29  ;;  %p305_p9 = scmp.lt.s32.totalorder (!%p251_p8), %s562_s6, 7 }
  0x21   : > { %v591_v8 = vld [vmem:[%s259_s30 + $0x30] sm:$0xf]  ;;  %v609_v9 = vld [vmem:[%s259_s30 + $0x34] sm:$0xf0]  ;;  %v608_v10 = vld [vmem:[%s259_s30 + $0x34] sm:$0xf] }
  0x22   : > { %v592_v11 = vor.u32 %v609_v9, %v591_v8  ;;  %v593_v12 = vld [vmem:[%s259_s30 + $0x38] sm:$0xf0]  ;;  %v583_v13 = vld [vmem:[%s259_s30 + $0x20] sm:$0xf]  ;;  %v607_v14 = vld [vmem:[%s259_s30 + $0x24] sm:$0xf0] }
  0x23   : > { %v596_v15 = vor.u32 %v608_v10, %v593_v12  ;;  %v606_v16 = vld [vmem:[%s259_s30 + $0x24] sm:$0xf]  ;;  %v585_v17 = vld [vmem:[%s259_s30 + $0x28] sm:$0xf0]  ;;  %v584_v18 = vor.u32 %v607_v14, %v583_v13  ;;  %v575_v20 = vld [vmem:[%s259_s30 + $0x10] sm:$0xf] }
  0x24   : > { %385 = vmatpush.bf16.msra.mxu0 %v592_v11  ;;  %v588_v19 = vor.u32 %v606_v16, %v585_v17  ;;  %v605_v21 = vld [vmem:[%s259_s30 + $0x14] sm:$0xf0]  ;;  %v604_v22 = vld [vmem:[%s259_s30 + $0x14] sm:$0xf]  ;;  %v577_v23 = vld [vmem:[%s259_s30 + $0x18] sm:$0xf0] }
  0x25   : > { %398 = vmatpush.bf16.msra.mxu1 %v596_v15  ;;  %v576_v24 = vor.u32 %v605_v21, %v575_v20  ;;  %v580_v25 = vor.u32 %v604_v22, %v577_v23  ;;  %v567_v26 = vld [vmem:[%s259_s30] sm:$0xf]  ;;  %v603_v27 = vld [vmem:[%s259_s30 + $0x4] sm:$0xf0]  ;;  %v602_v28 = vld [vmem:[%s259_s30 + $0x4] sm:$0xf] }
  0x26   : > { %v569_v29 = vld [vmem:[%s259_s30 + $0x8] sm:$0xf0]  ;;  %v568_v30 = vor.u32 %v603_v27, %v567_v26  ;;  %v328_v32 = vld [vmem:[%s781_s0] sm:$0xf]  ;;  %vm377_vm0 = vcmask 523264   ;;  %s792_s6 = smov (!%p305_p9, %s562_s6), 7 }
  0x27   : > { %v572_v31 = vor.u32 %v602_v28, %v569_v29  ;;  %s307_s9 = scalar_lea.vmem %s783_s2, %s792_s6  ;;  %s564_s10 = sshll.u32 %s792_s6, 3 }
  0x28   : > { %386 = vmatpush.bf16.msra.mxu0 %v584_v18  ;;  %v416_v33 = vld [vmem:[%s307_s9] sm:$0x3]  ;;  %s317_s18 = scalar_lea.vmem %s784_s3, %s564_s10 }
  0x29   : > { %399 = vmatpush.bf16.msra.mxu1 %v588_v19  ;;  %v418_v34 = vperm.slane %v416_v33, 0  ;;  %v419_v35 = vperm.slane %v416_v33, 1 }
  0x2c   : > { %387 = vmatpush.bf16.msra.mxu0 %v576_v24 }
  0x2d   : > { %400 = vmatpush.bf16.msra.mxu1 %v580_v25 }
  0x30   : > { %388 = vmatpush.bf16.msra.mxu0 %v568_v30 }
  0x31   : > { %401 = vmatpush.bf16.msra.mxu1 %v572_v31 }
  0x33   : > { %597 = vmatmul.msk.bf16.vlgmr.msra.gmra.mxu0 %vm377_vm0, %v328_v32 }
  0x34   : > { %598 = vmatmul.msk.bf16.vlgmr.msra.gmra.mxu1 %vm377_vm0, %v328_v32 }
  0xb0   : > { %v390_v36 = vpop.f32.mrf.mxu0 }
  0xb1   : > { %v422_v37 = vadd.f32 %v418_v34, %v390_v36  ;;  %v403_v38 = vpop.f32.mrf.mxu1 }
  0xb2   : > { %v423_v39 = vadd.f32 %v419_v35, %v403_v38 }
  0xb3   : > { %vm424_vm1 = vcmp.ge.f32.partialorder %v422_v37, 0.0  ;;  %v426_v40 = vmul.f32 0.01, %v422_v37 }
  0xb4   : > { %vm425_vm2 = vcmp.ge.f32.partialorder %v423_v39, 0.0  ;;  %v427_v41 = vmul.f32 0.01, %v423_v39 }
  0xb5   : > { %v428_v42 = vsel %vm424_vm1, %v422_v37, %v426_v40 }
  0xb6   : > { %430 = vst [vmem:[%s317_s18] sm:$0xff] %v428_v42  ;;  %v429_v43 = vsel %vm425_vm2, %v423_v39, %v427_v41 }
  0xb7   : > { %431 = vst [vmem:[%s317_s18 + $0x8] sm:$0xff] %v429_v43 }
  0xb8   : > { %v392_v44 = vpop.f32.mrf.mxu0 }
  0xb9   : > { %v405_v45 = vpop.f32.mrf.mxu1 }
  0xba PF: > { %s13_s16 = sadd.s32 1, %s688_s16   ;;  %s785_s12 = smov %s676_s13 }
  0xbb   : > { %p10_p10 = scmp.ge.s32.totalorder %s13_s16, 6   ;;  %s786_s13 = smov %s745_s20 }
  0xbc   : > { %s787_s14 = smov %s684_s15  ;;  %s788_s15 = smov %s790_s17 }
  0xbd   :  { %12 = sbr.rel (!%p10_p10) target bundleno = 3 (0x3), region = 119 }

// kernel: cnn2d_forward.9
= control target key start
LH: loop header
LB: loop body
LE: loop exit
PB: predicated region body
PF: predicated region fallthrough
CT: control target
= control target key end

     0   :  { %s1235_s1 = inlined_call_operand.vmem [shape: bf16[1024,128], index: 1, kind: input, shape index: {}]   ;;  %s1236_s0 = inlined_call_operand.vmem [shape: bf16[8,1024], index: 0, kind: input, shape index: {}]   ;;  %s1237_s2 = inlined_call_operand.vmem [shape: f32[1,128], index: 2, kind: input, shape index: {}]   ;;  %s1238_s3 = inlined_call_operand.vmem [shape: f32[8,128], index: 3, kind: output, shape index: {}]  }
   0x1   :  { %v947_v0 = vld [vmem:[%s1235_s1 + $0x38] sm:$0xff]  ;;  %v946_v4 = vld [vmem:[%s1235_s1 + $0x30] sm:$0xff]  ;;  %v945_v8 = vld [vmem:[%s1235_s1 + $0x28] sm:$0xff] }
   0x2   :  { %v955_v1 = vld [vmem:[%s1235_s1 + $0x78] sm:$0xff]  ;;  %564 = vmatpush.bf16.msra.mxu0 %v947_v0  ;;  %v954_v5 = vld [vmem:[%s1235_s1 + $0x70] sm:$0xff]  ;;  %v953_v9 = vld [vmem:[%s1235_s1 + $0x68] sm:$0xff] }
   0x3   :  { %v963_v2 = vld [vmem:[%s1235_s1 + $0xb8] sm:$0xff]  ;;  %577 = vmatpush.bf16.msra.mxu1 %v955_v1  ;;  %v962_v6 = vld [vmem:[%s1235_s1 + $0xb0] sm:$0xff]  ;;  %v961_v10 = vld [vmem:[%s1235_s1 + $0xa8] sm:$0xff] }
   0x4   :  { %v971_v3 = vld [vmem:[%s1235_s1 + $0xf8] sm:$0xff]  ;;  %590 = vmatpush.bf16.msra.mxu2 %v963_v2  ;;  %v970_v7 = vld [vmem:[%s1235_s1 + $0xf0] sm:$0xff]  ;;  %v969_v11 = vld [vmem:[%s1235_s1 + $0xe8] sm:$0xff] }
   0x5   :  { %603 = vmatpush.bf16.msra.mxu3 %v971_v3  ;;  %v944_v12 = vld [vmem:[%s1235_s1 + $0x20] sm:$0xff]  ;;  %v943_v16 = vld [vmem:[%s1235_s1 + $0x18] sm:$0xff]  ;;  %v942_v20 = vld [vmem:[%s1235_s1 + $0x10] sm:$0xff] }
   0x6   :  { %565 = vmatpush.bf16.msra.mxu0 %v946_v4  ;;  %v952_v13 = vld [vmem:[%s1235_s1 + $0x60] sm:$0xff]  ;;  %v951_v17 = vld [vmem:[%s1235_s1 + $0x58] sm:$0xff]  ;;  %v950_v21 = vld [vmem:[%s1235_s1 + $0x50] sm:$0xff] }
   0x7   :  { %578 = vmatpush.bf16.msra.mxu1 %v954_v5  ;;  %v960_v14 = vld [vmem:[%s1235_s1 + $0xa0] sm:$0xff]  ;;  %v959_v18 = vld [vmem:[%s1235_s1 + $0x98] sm:$0xff]  ;;  %v958_v22 = vld [vmem:[%s1235_s1 + $0x90] sm:$0xff] }
   0x8   :  { %591 = vmatpush.bf16.msra.mxu2 %v962_v6  ;;  %v968_v15 = vld [vmem:[%s1235_s1 + $0xe0] sm:$0xff]  ;;  %v967_v19 = vld [vmem:[%s1235_s1 + $0xd8] sm:$0xff]  ;;  %v966_v23 = vld [vmem:[%s1235_s1 + $0xd0] sm:$0xff] }
   0x9   :  { %604 = vmatpush.bf16.msra.mxu3 %v970_v7  ;;  %v941_v24 = vld [vmem:[%s1235_s1 + $0x8] sm:$0xff]  ;;  %v20_v29 = vld [vmem:[%s1236_s0] sm:$0xff]  ;;  %v979_v38 = vld [vmem:[%s1235_s1 + $0x138] sm:$0xff] }
   0xa   :  { %566 = vmatpush.bf16.msra.mxu0 %v945_v8  ;;  %v949_v25 = vld [vmem:[%s1235_s1 + $0x48] sm:$0xff]  ;;  %v940_v30 = vld [vmem:[%s1235_s1] sm:$0xff]  ;;  %v156_v36 = vunpack.c.l.b16 %v20_v29  ;;  %v157_v37 = vunpack.c.h.b16 %v20_v29  ;;  %v987_v39 = vld [vmem:[%s1235_s1 + $0x178] sm:$0xff] }
   0xb   :  { %579 = vmatpush.bf16.msra.mxu1 %v953_v9  ;;  %v957_v26 = vld [vmem:[%s1235_s1 + $0x88] sm:$0xff]  ;;  %v948_v31 = vld [vmem:[%s1235_s1 + $0x40] sm:$0xff]  ;;  %v995_v40 = vld [vmem:[%s1235_s1 + $0x1b8] sm:$0xff] }
   0xc   :  { %592 = vmatpush.bf16.msra.mxu2 %v961_v10  ;;  %v965_v27 = vld [vmem:[%s1235_s1 + $0xc8] sm:$0xff]  ;;  %v956_v34 = vld [vmem:[%s1235_s1 + $0x80] sm:$0xff]  ;;  %v1003_v41 = vld [vmem:[%s1235_s1 + $0x1f8] sm:$0xff]  ;;  %v164_v44 = vpack.c.b16 %v156_v36, %v156_v36  ;;  %v165_v45 = vpack.c.b16 %v157_v37, %v157_v37 }
   0xd   :  { %605 = vmatpush.bf16.msra.mxu3 %v969_v11  ;;  %v21_v28 = vld [vmem:[%s1236_s0 + $0x8] sm:$0xff]  ;;  %v964_v35 = vld [vmem:[%s1235_s1 + $0xc0] sm:$0xff]  ;;  %v978_v46 = vld [vmem:[%s1235_s1 + $0x130] sm:$0xff] }
   0xe   :  { %567 = vmatpush.bf16.msra.mxu0 %v944_v12  ;;  %v158_v32 = vunpack.c.l.b16 %v21_v28  ;;  %v159_v33 = vunpack.c.h.b16 %v21_v28  ;;  %v986_v47 = vld [vmem:[%s1235_s1 + $0x170] sm:$0xff]  ;;  %v977_v50 = vld [vmem:[%s1235_s1 + $0x128] sm:$0xff]  ;;  %v976_v54 = vld [vmem:[%s1235_s1 + $0x120] sm:$0xff] }
   0xf   :  { %580 = vmatpush.bf16.msra.mxu1 %v952_v13  ;;  %v994_v48 = vld [vmem:[%s1235_s1 + $0x1b0] sm:$0xff]  ;;  %v985_v51 = vld [vmem:[%s1235_s1 + $0x168] sm:$0xff]  ;;  %v984_v55 = vld [vmem:[%s1235_s1 + $0x160] sm:$0xff] }
  0x10   :  { %593 = vmatpush.bf16.msra.mxu2 %v960_v14  ;;  %v166_v42 = vpack.c.b16 %v158_v32, %v158_v32  ;;  %v167_v43 = vpack.c.b16 %v159_v33, %v159_v33  ;;  %v1002_v49 = vld [vmem:[%s1235_s1 + $0x1f0] sm:$0xff]  ;;  %v993_v52 = vld [vmem:[%s1235_s1 + $0x1a8] sm:$0xff]  ;;  %v992_v56 = vld [vmem:[%s1235_s1 + $0x1a0] sm:$0xff] }
  0x11   :  { %606 = vmatpush.bf16.msra.mxu3 %v968_v15  ;;  %v1001_v53 = vld [vmem:[%s1235_s1 + $0x1e8] sm:$0xff]  ;;  %v1000_v57 = vld [vmem:[%s1235_s1 + $0x1e0] sm:$0xff]  ;;  %v975_v58 = vld [vmem:[%s1235_s1 + $0x118] sm:$0xff] }
  0x12   :  { %568 = vmatpush.bf16.msra.mxu0 %v943_v16  ;;  %v983_v59 = vld [vmem:[%s1235_s1 + $0x158] sm:$0xff]  ;;  %v974_v62 = vld [vmem:[%s1235_s1 + $0x110] sm:$0xff]  ;;  %v973_v2 = vld [vmem:[%s1235_s1 + $0x108] sm:$0xff] }
  0x13   :  { %581 = vmatpush.bf16.msra.mxu1 %v951_v17  ;;  %v991_v60 = vld [vmem:[%s1235_s1 + $0x198] sm:$0xff]  ;;  %v982_v63 = vld [vmem:[%s1235_s1 + $0x150] sm:$0xff]  ;;  %v981_v3 = vld [vmem:[%s1235_s1 + $0x148] sm:$0xff] }
  0x14   :  { %594 = vmatpush.bf16.msra.mxu2 %v959_v18  ;;  %v999_v61 = vld [vmem:[%s1235_s1 + $0x1d8] sm:$0xff]  ;;  %v990_v0 = vld [vmem:[%s1235_s1 + $0x190] sm:$0xff]  ;;  %v989_v5 = vld [vmem:[%s1235_s1 + $0x188] sm:$0xff] }
  0x15   :  { %607 = vmatpush.bf16.msra.mxu3 %v967_v19  ;;  %v998_v1 = vld [vmem:[%s1235_s1 + $0x1d0] sm:$0xff]  ;;  %v997_v6 = vld [vmem:[%s1235_s1 + $0x1c8] sm:$0xff]  ;;  %v23_v7 = vld [vmem:[%s1236_s0 + $0x18] sm:$0xff] }
  0x16   :  { %569 = vmatpush.bf16.msra.mxu0 %v942_v20  ;;  %v22_v4 = vld [vmem:[%s1236_s0 + $0x10] sm:$0xff]  ;;  %v972_v10 = vld [vmem:[%s1235_s1 + $0x100] sm:$0xff]  ;;  %v162_v12 = vunpack.c.l.b16 %v23_v7  ;;  %v163_v13 = vunpack.c.h.b16 %v23_v7 }
  0x17   :  { %582 = vmatpush.bf16.msra.mxu1 %v950_v21  ;;  %v160_v8 = vunpack.c.l.b16 %v22_v4  ;;  %v161_v9 = vunpack.c.h.b16 %v22_v4  ;;  %v980_v11 = vld [vmem:[%s1235_s1 + $0x140] sm:$0xff] }
  0x18   :  { %595 = vmatpush.bf16.msra.mxu2 %v958_v22  ;;  %v988_v14 = vld [vmem:[%s1235_s1 + $0x180] sm:$0xff]  ;;  %v170_v18 = vpack.c.b16 %v162_v12, %v162_v12  ;;  %v171_v19 = vpack.c.b16 %v163_v13, %v163_v13 }
  0x19   :  { %608 = vmatpush.bf16.msra.mxu3 %v966_v23  ;;  %v996_v15 = vld [vmem:[%s1235_s1 + $0x1c0] sm:$0xff]  ;;  %v168_v16 = vpack.c.b16 %v160_v8, %v160_v8  ;;  %v169_v17 = vpack.c.b16 %v161_v9, %v161_v9 }
  0x1a   :  { %570 = vmatpush.bf16.msra.mxu0 %v941_v24 }
  0x1b   :  { %583 = vmatpush.bf16.msra.mxu1 %v949_v25 }
  0x1c   :  { %596 = vmatpush.bf16.msra.mxu2 %v957_v26 }
  0x1d   :  { %609 = vmatpush.bf16.msra.mxu3 %v965_v27 }
  0x1e   :  { %571 = vmatpush.bf16.msra.mxu0 %v940_v30 }
  0x1f   :  { %584 = vmatpush.bf16.msra.mxu1 %v948_v31 }
  0x20   :  { %597 = vmatpush.bf16.msra.mxu2 %v956_v34 }
  0x21   :  { %610 = vmatpush.bf16.msra.mxu3 %v964_v35  ;;  %572 = vmatmul.bf16.vlgmr.msra.gmra.mxu0 %v164_v44 }
  0x22   :  { %616 = vmatpush.bf16.msrb.mxu0 %v979_v38  ;;  %585 = vmatmul.bf16.vlgmr.msra.gmra.mxu1 %v165_v45  ;;  %v1004_v38 = vld [vmem:[%s1237_s2] ss:$0 sm:$0xff] }
  0x23   :  { %629 = vmatpush.bf16.msrb.mxu1 %v987_v39  ;;  %598 = vmatmul.bf16.vlgmr.msra.gmra.mxu2 %v166_v42 }
  0x24   :  { %642 = vmatpush.bf16.msrb.mxu2 %v995_v40  ;;  %611 = vmatmul.bf16.vlgmr.msra.gmra.mxu3 %v167_v43 }
  0x25   :  { %655 = vmatpush.bf16.msrb.mxu3 %v1003_v41 }
  0x26   :  { %617 = vmatpush.bf16.msrb.mxu0 %v978_v46 }
  0x27   :  { %630 = vmatpush.bf16.msrb.mxu1 %v986_v47 }
  0x28   :  { %643 = vmatpush.bf16.msrb.mxu2 %v994_v48 }
  0x29   :  { %656 = vmatpush.bf16.msrb.mxu3 %v1002_v49 }
  0x2a   :  { %618 = vmatpush.bf16.msrb.mxu0 %v977_v50 }
  0x2b   :  { %631 = vmatpush.bf16.msrb.mxu1 %v985_v51 }
  0x2c   :  { %644 = vmatpush.bf16.msrb.mxu2 %v993_v52 }
  0x2d   :  { %657 = vmatpush.bf16.msrb.mxu3 %v1001_v53 }
  0x2e   :  { %619 = vmatpush.bf16.msrb.mxu0 %v976_v54 }
  0x2f   :  { %632 = vmatpush.bf16.msrb.mxu1 %v984_v55 }
  0x30   :  { %645 = vmatpush.bf16.msrb.mxu2 %v992_v56 }
  0x31   :  { %658 = vmatpush.bf16.msrb.mxu3 %v1000_v57 }
  0x32   :  { %620 = vmatpush.bf16.msrb.mxu0 %v975_v58 }
  0x33   :  { %633 = vmatpush.bf16.msrb.mxu1 %v983_v59 }
  0x34   :  { %646 = vmatpush.bf16.msrb.mxu2 %v991_v60 }
  0x35   :  { %659 = vmatpush.bf16.msrb.mxu3 %v999_v61 }
  0x36   :  { %621 = vmatpush.bf16.msrb.mxu0 %v974_v62 }
  0x37   :  { %634 = vmatpush.bf16.msrb.mxu1 %v982_v63 }
  0x38   :  { %647 = vmatpush.bf16.msrb.mxu2 %v990_v0 }
  0x39   :  { %660 = vmatpush.bf16.msrb.mxu3 %v998_v1 }
  0x3a   :  { %622 = vmatpush.bf16.msrb.mxu0 %v973_v2 }
  0x3b   :  { %635 = vmatpush.bf16.msrb.mxu1 %v981_v3 }
  0x3c   :  { %648 = vmatpush.bf16.msrb.mxu2 %v989_v5 }
  0x3d   :  { %661 = vmatpush.bf16.msrb.mxu3 %v997_v6 }
  0x3e   :  { %623 = vmatpush.bf16.msrb.mxu0 %v972_v10 }
  0x3f   :  { %636 = vmatpush.bf16.msrb.mxu1 %v980_v11 }
  0x40   :  { %649 = vmatpush.bf16.msrb.mxu2 %v988_v14 }
  0x41   :  { %662 = vmatpush.bf16.msrb.mxu3 %v996_v15  ;;  %624 = vmatmul.bf16.vlgmr.msrb.gmra.mxu0 %v168_v16 }
  0x42   :  { %637 = vmatmul.bf16.vlgmr.msrb.gmra.mxu1 %v169_v17 }
  0x43   :  { %650 = vmatmul.bf16.vlgmr.msrb.gmra.mxu2 %v170_v18 }
  0x44   :  { %663 = vmatmul.bf16.vlgmr.msrb.gmra.mxu3 %v171_v19 }
  0x9e   :  { %v573_v20 = vpop.f32.mrf.mxu0 }
  0x9f   :  { %v586_v21 = vpop.f32.mrf.mxu1 }
  0xa0   :  { %v587_v28 = vadd.f32 %v586_v21, %v573_v20 }
  0xa6   :  { %v599_v22 = vpop.f32.mrf.mxu2  ;;  %v575_v24 = vpop.f32.mrf.mxu0 }
  0xa7   :  { %v612_v23 = vpop.f32.mrf.mxu3  ;;  %v588_v25 = vpop.f32.mrf.mxu1  ;;  %v600_v29 = vadd.f32 %v599_v22, %v587_v28 }
  0xa9   :  { %v613_v30 = vadd.f32 %v612_v23, %v600_v29 }
  0xae   :  { %v601_v26 = vpop.f32.mrf.mxu2 }
  0xaf   :  { %v614_v27 = vpop.f32.mrf.mxu3 }
  0xbe   :  { %v625_v31 = vpop.f32.mrf.mxu0 }
  0xbf   :  { %v638_v32 = vpop.f32.mrf.mxu1  ;;  %v626_v33 = vadd.f32 %v625_v31, %v613_v30 }
  0xc1   :  { %v639_v34 = vadd.f32 %v638_v32, %v626_v33 }
  0xc6   :  { %v651_v35 = vpop.f32.mrf.mxu2  ;;  %v627_v39 = vpop.f32.mrf.mxu0 }
  0xc7   :  { %v664_v36 = vpop.f32.mrf.mxu3  ;;  %v652_v37 = vadd.f32 %v651_v35, %v639_v34  ;;  %v640_v40 = vpop.f32.mrf.mxu1 }
  0xc9   :  { %v665_v41 = vadd.f32 %v664_v36, %v652_v37 }
  0xcb   :  { %v678_v42 = vadd.f32 %v1004_v38, %v665_v41 }
  0xcd   :  { %679 = vst [vmem:[%s1238_s3] sm:$0xff] %v678_v42 }
  0xce   :  { %v653_v43 = vpop.f32.mrf.mxu2 }
  0xcf   :  { %v666_v44 = vpop.f32.mrf.mxu3 }

</bundles_post_ra>
